<compile_context>
chip_gen: v6e
topology: v6e:2x2x1
jax: 0.10.0
libtpu: 0.0.40
codegen_flags: <defaults>
</compile_context>

<pallas_src>
import functools
import numpy as np
import jax
import jax.numpy as jnp
from jax.experimental import pallas as pl
from jax.experimental.pallas import tpu as pltpu

OUT_PAD = 128  # lane-dense fused head output width (2 + 3 + 2 = 7 real columns)


def bc4serve_kernel(x_ref, w_in_ref, w_heads_ref, out_ref):
    # x_ref:       (TB, 26)   fused [state17 | player_embed | 1]
    # w_in_ref:    (26, H)    fused [w_fc_state ; w_fc_embed ; b_fc]
    # w_heads_ref: (H, 128)   fused [w_land | w_shot | w_move | zero-pad]
    # out_ref:     (TB, 128)  lane-dense fused logits
    h = jnp.dot(x_ref[...], w_in_ref[...], preferred_element_type=jnp.float32)
    h = jnp.maximum(h, 0.0)                                       # ReLU
    out_ref[...] = jnp.dot(h, w_heads_ref[...],
                           preferred_element_type=jnp.float32)


def prepare_params(w_fc_s, w_fc_e, b_fc, w_land, w_shot, w_move):
    """Done once per weight load: fuse fc weights + bias into one (26, H)
    matrix and the three heads into one zero-padded lane-dense (H, 128)."""
    w_in = jnp.concatenate([w_fc_s, w_fc_e, b_fc], axis=0)        # (26, H)
    w_heads = jnp.concatenate([w_land, w_shot, w_move], axis=1)   # (H, 7)
    w_heads = jnp.pad(w_heads, ((0, 0), (0, OUT_PAD - w_heads.shape[1])))
    # NOTE: casting w_in/w_heads (and x_fused) to bf16 with f32 accumulation
    # halves weight DMA bytes once batched; kept f32 here for the strict
    # 1e-5 reference check.
    return w_in.astype(jnp.float32), w_heads.astype(jnp.float32)


@functools.partial(jax.jit, static_argnames=("block_b",))
def bc4serve_forward(x, emb, w_in, w_heads, *, block_b=8):
    """x: (B, 18) float32 -- cols 0..16 = state features, col 17 = player id."""
    x = x.astype(jnp.float32)
    B = x.shape[0]
    P = emb.shape[0]
    K, H = w_in.shape

    # Embedding gather + concat + bias column in plain JAX (XLA handles the
    # tiny gather better than an in-kernel one-hot matmul); clamp ids so an
    # out-of-range id cannot read out of bounds.
    ids = jnp.clip(x[:, 17].astype(jnp.int32), 0, P - 1)
    embeds = jnp.take(emb, ids, axis=0)                           # (B, 8)
    ones = jnp.ones((B, 1), jnp.float32)
    x_fused = jnp.concatenate([x[:, :17], embeds, ones], axis=1)  # (B, K=26)

    # Pad batch so it tiles evenly into the grid (block_b must be a multiple of 8).
    bp = ((B + block_b - 1) // block_b) * block_b
    if bp != B:
        x_fused = jnp.pad(x_fused, ((0, bp - B), (0, 0)))

    out = pl.pallas_call(
        bc4serve_kernel,
        out_shape=jax.ShapeDtypeStruct((bp, OUT_PAD), jnp.float32),
        grid=(bp // block_b,),
        in_specs=[
            pl.BlockSpec((block_b, K), lambda i: (i, 0)),    # batch-tiled input
            pl.BlockSpec((K, H), lambda i: (0, 0)),          # weights VMEM-resident
            pl.BlockSpec((H, OUT_PAD), lambda i: (0, 0)),    # weights VMEM-resident
        ],
        out_specs=pl.BlockSpec((block_b, OUT_PAD), lambda i: (i, 0)),
        compiler_params=pltpu.CompilerParams(
            dimension_semantics=("parallel",)),              # both TCs on v7x
    )(x_fused, w_in, w_heads)

    out = out[:B]
    land_logit = out[:, 0:2]
    shot_logit = out[:, 2:5]
    move_logit = out[:, 5:7]
    return land_logit, shot_logit, move_logit


if __name__ == "__main__":
    # Shapes consistent with the module: input_size = 17 + 8 = 25,
    # hidden_size = 32, player_id_len = 16.  Batch = 27 (deliberately not a
    # multiple of the batch tile to exercise the pad/slice path).
    B, H, P = 27, 32, 16
    key = jax.random.PRNGKey(0)
    keys = jax.random.split(key, 9)

    emb    = jax.random.normal(keys[0], (P, 8), jnp.float32) * 0.1
    w_fc_s = jax.random.normal(keys[1], (17, H), jnp.float32) * 0.1
    w_fc_e = jax.random.normal(keys[2], (8, H), jnp.float32) * 0.1
    b_fc   = jax.random.normal(keys[3], (1, H), jnp.float32) * 0.1
    w_land = jax.random.normal(keys[4], (H, 2), jnp.float32) * 0.1
    w_shot = jax.random.normal(keys[5], (H, 3), jnp.float32) * 0.1
    w_move = jax.random.normal(keys[6], (H, 2), jnp.float32) * 0.1

    # input: 17 float features + player id (stored as float) in column 17
    feats = jax.random.normal(keys[7], (B, 17), jnp.float32)
    ids = jax.random.randint(keys[8], (B, 1), 0, P).astype(jnp.float32)
    x = jnp.concatenate([feats, ids], axis=1)                     # (B, 18)

    w_in, w_heads = prepare_params(w_fc_s, w_fc_e, b_fc, w_land, w_shot, w_move)
    land, shot, move = bc4serve_forward(x, emb, w_in, w_heads, block_b=8)
    jax.block_until_ready((land, shot, move))

    # pure-JAX reference of the original module semantics
    ids_i = x[:, 17].astype(jnp.int32)
    embeds_ref = emb[ids_i]
    h_ref = jnp.maximum(x[:, :17] @ w_fc_s + embeds_ref @ w_fc_e + b_fc, 0.0)
    land_ref = h_ref @ w_land
    shot_ref = h_ref @ w_shot
    move_ref = h_ref @ w_move
    assert np.allclose(np.asarray(land), np.asarray(land_ref), atol=1e-5)
    assert np.allclose(np.asarray(shot), np.asarray(shot_ref), atol=1e-5)
    assert np.allclose(np.asarray(move), np.asarray(move_ref), atol=1e-5)

    print("KERNEL_OK")
</pallas_src>

<mosaic_0001>
module attributes {stable_mosaic.version = 11 : i64} {
  func.func @bc4serve_kernel(%arg0: i32, %arg1: memref<8x26xf32, #tpu.memory_space<vmem>>, %arg2: memref<26x32xf32, #tpu.memory_space<vmem>>, %arg3: memref<32x128xf32, #tpu.memory_space<vmem>>, %arg4: memref<8x128xf32, #tpu.memory_space<vmem>>) attributes {dimension_semantics = [#tpu.dimension_semantics<parallel>], iteration_bounds = array<i64: 4>, scalar_prefetch = 0 : i64, scratch_operands = 0 : i64, tpu.core_type = #tpu.core_type<tc>, window_params = [{transform_indices = @transform_0, window_bounds = array<i64: 8, 26>}, {pipeline_mode = #tpu.pipeline_mode<synchronous>, transform_indices = @transform_1, window_bounds = array<i64: 26, 32>}, {pipeline_mode = #tpu.pipeline_mode<synchronous>, transform_indices = @transform_2, window_bounds = array<i64: 32, 128>}, {transform_indices = @transform_3, window_bounds = array<i64: 8, 128>}]} {
    %c0 = arith.constant 0 : index
    %c0_0 = arith.constant 0 : index
    %0 = vector.load %arg1[%c0, %c0_0] : memref<8x26xf32, #tpu.memory_space<vmem>>, vector<8x26xf32>
    %c0_1 = arith.constant 0 : index
    %c0_2 = arith.constant 0 : index
    %1 = vector.load %arg2[%c0_1, %c0_2] : memref<26x32xf32, #tpu.memory_space<vmem>>, vector<26x32xf32>
    %cst = arith.constant dense<0.000000e+00> : vector<8x32xf32>
    %2 = tpu.matmul %0, %1, %cst {dimension_numbers = #tpu.dot_dimension_numbers<[1], [0], [0], [1], [0, 0, 1, 1], [], []>} : vector<8x26xf32>, vector<26x32xf32>, vector<8x32xf32> -> vector<8x32xf32>
    %cst_3 = arith.constant 0.000000e+00 : f32
    %3 = vector.broadcast %cst_3 : f32 to vector<8x32xf32>
    %4 = arith.maximumf %2, %3 : vector<8x32xf32>
    %c0_4 = arith.constant 0 : index
    %c0_5 = arith.constant 0 : index
    %5 = vector.load %arg3[%c0_4, %c0_5] : memref<32x128xf32, #tpu.memory_space<vmem>>, vector<32x128xf32>
    %cst_6 = arith.constant dense<0.000000e+00> : vector<8x128xf32>
    %6 = tpu.matmul %4, %5, %cst_6 {dimension_numbers = #tpu.dot_dimension_numbers<[1], [0], [0], [1], [0, 0, 1, 1], [], []>} : vector<8x32xf32>, vector<32x128xf32>, vector<8x128xf32> -> vector<8x128xf32>
    %c0_7 = arith.constant 0 : index
    %c0_8 = arith.constant 0 : index
    %7 = vector.load %arg4[%c0_7, %c0_8] : memref<8x128xf32, #tpu.memory_space<vmem>>, vector<8x128xf32>
    tpu.vector_store %arg4[%c0_7, %c0_8], %6 {strides = array<i32>} : memref<8x128xf32, #tpu.memory_space<vmem>>, vector<8x128xf32>,
    return
  }
  func.func @transform_0(%arg0: i32) -> (i32, i32) {
    %c0_i32 = arith.constant 0 : i32
    %c0_i32_0 = arith.constant 0 : i32
    return %arg0, %c0_i32 : i32, i32
  }
  func.func @transform_1(%arg0: i32) -> (i32, i32) {
    %c0_i32 = arith.constant 0 : i32
    %c0_i32_0 = arith.constant 0 : i32
    %c0_i32_1 = arith.constant 0 : i32
    return %c0_i32, %c0_i32_0 : i32, i32
  }
  func.func @transform_2(%arg0: i32) -> (i32, i32) {
    %c0_i32 = arith.constant 0 : i32
    %c0_i32_0 = arith.constant 0 : i32
    %c0_i32_1 = arith.constant 0 : i32
    return %c0_i32, %c0_i32_0 : i32, i32
  }
  func.func @transform_3(%arg0: i32) -> (i32, i32) {
    %c0_i32 = arith.constant 0 : i32
    %c0_i32_0 = arith.constant 0 : i32
    return %arg0, %c0_i32 : i32, i32
  }
}

</mosaic_0001>

<bundles_post_ra>
// kernel: bc4serve_forward.1
= control target key start
LH: loop header
LB: loop body
LE: loop exit
PB: predicated region body
PF: predicated region fallthrough
CT: control target
= control target key end

     0   :  { %s466_s12 = smov 0   ;;  %s509_s0 = inlined_call_operand.vmem [shape: f32[32,26], index: 0, kind: input, shape index: {}]   ;;  %s510_s1 = inlined_call_operand.vmem [shape: f32[26,32], index: 1, kind: input, shape index: {}]   ;;  %s511_s2 = inlined_call_operand.vmem [shape: f32[32,128], index: 2, kind: input, shape index: {}]   ;;  %s512_s3 = inlined_call_operand.vmem [shape: f32[32,128], index: 3, kind: output, shape index: {}]  }
   0x1 LB: > { %s382_s13 = sadd.s32 4294967295, %s442_s12   ;;  %p386_p0 = scmp.ge.s32.totalorder %s442_s12, 1  ;;  %s442_s12 = sphi %s466_s12, %s13_s12  }
   0x2   : > { %p136_p1 = scmp.lt.s32.totalorder %s442_s12, 5 }
   0x4   : > { %p137_p2 = pnand %p386_p0, %p136_p1 }
   0x5   : > { %p158_p3 = scmp.lt.s32.totalorder (!%p137_p2), %s382_s13, 3 }
   0x6   : > { %140 = sbr.rel (%p137_p2) target bundleno = 410 (0x19a), region = 32 }
   0xb   : > { %v170_v0 = vld [vmem:[%s510_s1 + $0x18] sm:$0x3]  ;;  %vm175_vm0 = vcmask 1041408   ;;  %v444_v1 = vmov 0.0   ;;  %v169_v2 = vld [vmem:[%s510_s1 + $0x10] sm:$0xff]  ;;  %vm445_vm1 = vmmov 0  }
   0xc   : > { %404 = vmatprep.subr.mxu0 %v444_v1  ;;  %415 = vmatprep.subr.mxu1 %v444_v1  ;;  %v253_v3 = vld [vmem:[%s511_s2 + $0x18] sm:$0xff]  ;;  %v252_v4 = vld [vmem:[%s511_s2 + $0x10] sm:$0xff]  ;;  %v168_v5 = vld [vmem:[%s510_s1 + $0x8] sm:$0xff]  ;;  %s514_s13 = smov (!%p158_p3, %s382_s13), 3  ;;  %vm171_vm2 = vcmask 211968   ;;  %vm254_vm3 = vcmask 261120  }
   0xd   : > { %405 = vmatpush3.msk.msra.mxu0 %vm175_vm0, %v170_v0  ;;  %412 = vmatprep.mubr.msk.f32.mxu0 %vm445_vm1, %v444_v1  ;;  %v167_v6 = vld [vmem:[%s510_s1] sm:$0xff]  ;;  %s387_s26 = sshll.u32 %s514_s13, 3  ;;  %v251_v8 = vld [vmem:[%s511_s2 + $0x8] sm:$0xff] }
   0xe   : > { %406 = vmatprep.subr.mxu0 %v444_v1  ;;  %416 = vmatpush3.msra.mxu1 %v253_v3  ;;  %s161_s29 = scalar_lea.vmem %s509_s0, %s387_s26  ;;  %v250_v9 = vld [vmem:[%s511_s2] sm:$0xff]  ;;  %s165_s9 = scalar_lea.vmem %s512_s3, %s387_s26 }
   0xf   : > { %407 = vmatpush3.msra.mxu0 %v169_v2  ;;  %417 = vmatprep.subr.mxu1 %v444_v1  ;;  %v166_v7 = vld [vmem:[%s161_s29] sm:$0xff] }
  0x10   : > { %408 = vmatprep.subr.mxu0 %v444_v1  ;;  %418 = vmatpush3.msra.mxu1 %v252_v4 }
  0x11   : > { %409 = vmatpush3.msra.mxu0 %v168_v5  ;;  %419 = vmatprep.subr.mxu1 %v444_v1 }
  0x12   : > { %410 = vmatprep.subr.mxu0 %v444_v1  ;;  %423 = vmatprep.mubr.msk.f32.mxu1 %vm445_vm1, %v444_v1 }
  0x13   : > { %411 = vmatpush3.msra.mxu0 %v167_v6  ;;  %420 = vmatpush3.msra.mxu1 %v251_v8 }
  0x14   : > { %413 = vmatmul.mubr.msk.f32.vlgmr.msra.gmra.mxu0 %vm171_vm2, %v166_v7  ;;  %421 = vmatprep.subr.mxu1 %v444_v1 }
  0x15   : > { %422 = vmatpush3.msra.mxu1 %v250_v9 }
  0xd4   : > { %v245_v10 = vpop.f32.mrf.mxu0 }
  0xd5   : > { %v249_v11 = vmax.f32 %v245_v10, 0.0 }
  0xd6   : > { %v414_v12 = vpop.f32.mrf.mxu0 }
  0xd7   : > { %424 = vmatmul.mubr.msk.f32.vlgmr.msra.gmra.mxu1 %vm254_vm3, %v249_v11 }
 0x197   : > { %v324_v13 = vpop.f32.mrf.mxu1 }
 0x198   : > { %328 = vst [vmem:[%s165_s9] sm:$0xff] %v324_v13 }
 0x199   : > { %v425_v14 = vpop.f32.mrf.mxu1 }
 0x19a PF: > { %s13_s12 = sadd.s32 1, %s442_s12  }
 0x19b   : > { %p10_p4 = scmp.ge.s32.totalorder %s13_s12, 6  }
 0x19d   :  { %12 = sbr.rel (!%p10_p4) target bundleno = 1 (0x1), region = 62 }

</bundles_post_ra>
